<compile_context>
chip_gen: v7x
topology: tpu7x:2x2x1
jax: 0.10.0
libtpu: 0.0.40
codegen_flags: <defaults>
</compile_context>

<pallas_src>
import numpy as np
import jax
import jax.numpy as jnp
from jax.experimental import pallas as pl
from jax.experimental.pallas import tpu as pltpu

MU = 0.9          # Hw default mu
LANE = 128        # TPU lane width; output head padded to this


def make_hw_kernel(mu, s):
    scale = mu / s

    def kernel(x_ref, h_ref, dg_ref, wxi_ref, bxi_ref, wrou_ref, brou_ref,
               rep_ref, grp_ref, out_ref):
        x = x_ref[...]                                             # (TE, 2*ln)

        # Xi: per-edge (s, s) matrix kept flat as (TE, s*s).
        a_flat = jnp.tanh(
            jnp.dot(x, wxi_ref[...], preferred_element_type=jnp.float32)
            + bxi_ref[...])
        # mu / s / dg : one reciprocal per edge + broadcast multiply
        # (approx=False keeps it bit-accurate vs. the divide in the reference).
        inv_dg = pl.reciprocal(dg_ref[...], approx=False)          # (TE, 1)
        a_flat = a_flat * (scale * inv_dg)                         # (TE, s*s)

        # Rou on the first half of X: W_rou is zero-padded on the host so no
        # lane slice / concat is needed in-kernel; padded lanes stay exactly 0.
        b_vec = jnp.tanh(
            jnp.dot(x, wrou_ref[...], preferred_element_type=jnp.float32)
            + brou_ref[...])                                       # (TE, LANE)

        # Per-edge matvec  Hn[e, i] = sum_j A[e, i, j] * H[e, j]:
        #   h_rep[e, i*s+j] = H[e, j]        (constant lane-replicate matmul)
        #   (a_flat * h_rep) @ grp           (constant block-diag group-sum)
        h_rep = jnp.dot(h_ref[...], rep_ref[...],
                        preferred_element_type=jnp.float32)        # (TE, s*s)
        out_ref[...] = jnp.dot(a_flat * h_rep, grp_ref[...],
                               preferred_element_type=jnp.float32) + b_vec

    return kernel


def hw_forward(params, X, H, dg_list, *, mu=MU, tile_e=128):
    E, two_ln = X.shape
    ln = two_ln // 2
    s = params["w_rou"].shape[1]
    n_out = LANE                                   # lane-dense output slab
    e_pad = ((E + tile_e - 1) // tile_e) * tile_e  # pad edges to tile multiple

    # --- pad rows once (degree padded with 1.0 so no inf/NaN in dead rows) ---
    Xp = jnp.zeros((e_pad, two_ln), jnp.float32).at[:E].set(X.astype(jnp.float32))
    Hp = jnp.zeros((e_pad, s), jnp.float32).at[:E].set(H.astype(jnp.float32))
    dgp = jnp.ones((e_pad, 1), jnp.float32).at[:E, 0].set(
        dg_list.astype(jnp.float32))

    # --- host-side constant prep (one-time, outside the hot path) -----------
    w_rou_pad = np.zeros((two_ln, n_out), np.float32)
    w_rou_pad[:ln, :s] = np.asarray(params["w_rou"], np.float32)
    b_rou_pad = np.zeros((1, n_out), np.float32)
    b_rou_pad[:, :s] = np.asarray(params["b_rou"], np.float32)
    rep = np.zeros((s, s * s), np.float32)      # rep[j, i*s+j] = 1
    grp = np.zeros((s * s, n_out), np.float32)  # grp[i*s+j, i] = 1
    for i in range(s):
        for j in range(s):
            rep[j, i * s + j] = 1.0
            grp[i * s + j, i] = 1.0

    row = lambda c: pl.BlockSpec((tile_e, c), lambda i: (i, 0))
    full = lambda shp: pl.BlockSpec(shp, lambda i: (0, 0))

    out = pl.pallas_call(
        make_hw_kernel(mu, s),
        out_shape=jax.ShapeDtypeStruct((e_pad, n_out), jnp.float32),
        grid_spec=pltpu.PrefetchScalarGridSpec(
            num_scalar_prefetch=0,
            grid=(e_pad // tile_e,),
            in_specs=[
                row(two_ln),                 # X tile
                row(s),                      # H tile
                row(1),                      # dg tile
                full((two_ln, s * s)),       # w_xi
                full((1, s * s)),            # b_xi
                full((two_ln, n_out)),       # w_rou (zero-padded)
                full((1, n_out)),            # b_rou (zero-padded)
                full((s, s * s)),            # lane-replicate matrix
                full((s * s, n_out)),        # block-diag group-sum matrix
            ],
            out_specs=pl.BlockSpec((tile_e, n_out), lambda i: (i, 0)),
        ),
        compiler_params=pltpu.CompilerParams(
            dimension_semantics=("parallel",)),
    )(Xp, Hp, dgp,
      params["w_xi"].astype(jnp.float32), params["b_xi"].astype(jnp.float32),
      jnp.asarray(w_rou_pad), jnp.asarray(b_rou_pad),
      jnp.asarray(rep), jnp.asarray(grp))

    return out[:E, :s]


def hw_reference(params, X, H, dg_list, mu=MU):
    """Pure-JAX mirror of the PyTorch Hw.forward (for checking)."""
    s = params["w_rou"].shape[1]
    ln = params["w_rou"].shape[0]
    A = jnp.tanh(X @ params["w_xi"] + params["b_xi"]).reshape(-1, s, s)
    A = A * mu / s / dg_list[:, None, None]
    b = jnp.tanh(X[:, :ln] @ params["w_rou"] + params["b_rou"])
    return jnp.einsum("eij,ej->ei", A, H) + b


if __name__ == "__main__":
    feat_dim, stat_dim, n_edges = 4, 4, 56      # ln, s, E

    key = jax.random.PRNGKey(0)
    ks = jax.random.split(key, 7)
    X = jax.random.normal(ks[0], (n_edges, 2 * feat_dim), jnp.float32)
    H = jax.random.normal(ks[1], (n_edges, stat_dim), jnp.float32)
    dg_list = jax.random.randint(ks[2], (n_edges,), 1, 6).astype(jnp.float32)

    params = {
        "w_xi":  0.5 * jax.random.normal(ks[3], (2 * feat_dim, stat_dim * stat_dim), jnp.float32),
        "b_xi":  0.1 * jax.random.normal(ks[4], (1, stat_dim * stat_dim), jnp.float32),
        "w_rou": 0.5 * jax.random.normal(ks[5], (feat_dim, stat_dim), jnp.float32),
        "b_rou": 0.1 * jax.random.normal(ks[6], (1, stat_dim), jnp.float32),
    }

    out = hw_forward(params, X, H, dg_list)
    out = jax.block_until_ready(out)

    ref = hw_reference(params, X, H, dg_list)
    np.testing.assert_allclose(np.asarray(out), np.asarray(ref), rtol=1e-5, atol=1e-5)

    print("KERNEL_OK")
</pallas_src>

<mosaic_0001>
module attributes {stable_mosaic.version = 11 : i64} {
  func.func @kernel(%arg0: i32, %arg1: memref<128x8xf32, #tpu.memory_space<vmem>>, %arg2: memref<128x4xf32, #tpu.memory_space<vmem>>, %arg3: memref<128x1xf32, #tpu.memory_space<vmem>>, %arg4: memref<8x16xf32, #tpu.memory_space<vmem>>, %arg5: memref<1x16xf32, #tpu.memory_space<vmem>>, %arg6: memref<8x128xf32, #tpu.memory_space<vmem>>, %arg7: memref<1x128xf32, #tpu.memory_space<vmem>>, %arg8: memref<4x16xf32, #tpu.memory_space<vmem>>, %arg9: memref<16x128xf32, #tpu.memory_space<vmem>>, %arg10: memref<128x128xf32, #tpu.memory_space<vmem>>) attributes {dimension_semantics = [#tpu.dimension_semantics<parallel>], iteration_bounds = array<i64: 1>, scalar_prefetch = 0 : i64, scratch_operands = 0 : i64, tpu.core_type = #tpu.core_type<tc>, window_params = [{transform_indices = @transform_0, window_bounds = array<i64: 128, 8>}, {transform_indices = @transform_1, window_bounds = array<i64: 128, 4>}, {transform_indices = @transform_2, window_bounds = array<i64: 128, 1>}, {pipeline_mode = #tpu.pipeline_mode<synchronous>, transform_indices = @transform_3, window_bounds = array<i64: 8, 16>}, {pipeline_mode = #tpu.pipeline_mode<synchronous>, transform_indices = @transform_4, window_bounds = array<i64: 1, 16>}, {pipeline_mode = #tpu.pipeline_mode<synchronous>, transform_indices = @transform_5, window_bounds = array<i64: 8, 128>}, {pipeline_mode = #tpu.pipeline_mode<synchronous>, transform_indices = @transform_6, window_bounds = array<i64: 1, 128>}, {pipeline_mode = #tpu.pipeline_mode<synchronous>, transform_indices = @transform_7, window_bounds = array<i64: 4, 16>}, {pipeline_mode = #tpu.pipeline_mode<synchronous>, transform_indices = @transform_8, window_bounds = array<i64: 16, 128>}, {transform_indices = @transform_9, window_bounds = array<i64: 128, 128>}]} {
    %c0 = arith.constant 0 : index
    %c0_0 = arith.constant 0 : index
    %0 = vector.load %arg1[%c0, %c0_0] : memref<128x8xf32, #tpu.memory_space<vmem>>, vector<128x8xf32>
    %c0_1 = arith.constant 0 : index
    %c0_2 = arith.constant 0 : index
    %1 = vector.load %arg4[%c0_1, %c0_2] : memref<8x16xf32, #tpu.memory_space<vmem>>, vector<8x16xf32>
    %cst = arith.constant dense<0.000000e+00> : vector<128x16xf32>
    %2 = tpu.matmul %0, %1, %cst {dimension_numbers = #tpu.dot_dimension_numbers<[1], [0], [0], [1], [0, 0, 1, 1], [], []>} : vector<128x8xf32>, vector<8x16xf32>, vector<128x16xf32> -> vector<128x16xf32>
    %c0_3 = arith.constant 0 : index
    %c0_4 = arith.constant 0 : index
    %3 = vector.load %arg5[%c0_3, %c0_4] : memref<1x16xf32, #tpu.memory_space<vmem>>, vector<1x16xf32>
    %4 = vector.broadcast %3 : vector<1x16xf32> to vector<128x16xf32>
    %5 = arith.addf %2, %4 : vector<128x16xf32>
    %6 = math.tanh %5 : vector<128x16xf32>
    %c0_5 = arith.constant 0 : index
    %c0_6 = arith.constant 0 : index
    %7 = vector.load %arg3[%c0_5, %c0_6] : memref<128x1xf32, #tpu.memory_space<vmem>>, vector<128x1xf32>
    %8 = tpu.reciprocal %7 : vector<128x1xf32> -> vector<128x1xf32>
    %cst_7 = arith.constant 2.250000e-01 : f32
    %9 = vector.broadcast %cst_7 : f32 to vector<128x1xf32>
    %10 = arith.mulf %9, %8 : vector<128x1xf32>
    %11 = vector.broadcast %10 : vector<128x1xf32> to vector<128x16xf32>
    %12 = arith.mulf %6, %11 : vector<128x16xf32>
    %c0_8 = arith.constant 0 : index
    %c0_9 = arith.constant 0 : index
    %13 = vector.load %arg6[%c0_8, %c0_9] : memref<8x128xf32, #tpu.memory_space<vmem>>, vector<8x128xf32>
    %cst_10 = arith.constant dense<0.000000e+00> : vector<128x128xf32>
    %14 = tpu.matmul %0, %13, %cst_10 {dimension_numbers = #tpu.dot_dimension_numbers<[1], [0], [0], [1], [0, 0, 1, 1], [], []>} : vector<128x8xf32>, vector<8x128xf32>, vector<128x128xf32> -> vector<128x128xf32>
    %c0_11 = arith.constant 0 : index
    %c0_12 = arith.constant 0 : index
    %15 = vector.load %arg7[%c0_11, %c0_12] : memref<1x128xf32, #tpu.memory_space<vmem>>, vector<1x128xf32>
    %16 = vector.broadcast %15 : vector<1x128xf32> to vector<128x128xf32>
    %17 = arith.addf %14, %16 : vector<128x128xf32>
    %18 = math.tanh %17 : vector<128x128xf32>
    %c0_13 = arith.constant 0 : index
    %c0_14 = arith.constant 0 : index
    %19 = vector.load %arg2[%c0_13, %c0_14] : memref<128x4xf32, #tpu.memory_space<vmem>>, vector<128x4xf32>
    %c0_15 = arith.constant 0 : index
    %c0_16 = arith.constant 0 : index
    %20 = vector.load %arg8[%c0_15, %c0_16] : memref<4x16xf32, #tpu.memory_space<vmem>>, vector<4x16xf32>
    %cst_17 = arith.constant dense<0.000000e+00> : vector<128x16xf32>
    %21 = tpu.matmul %19, %20, %cst_17 {dimension_numbers = #tpu.dot_dimension_numbers<[1], [0], [0], [1], [0, 0, 1, 1], [], []>} : vector<128x4xf32>, vector<4x16xf32>, vector<128x16xf32> -> vector<128x16xf32>
    %22 = arith.mulf %12, %21 : vector<128x16xf32>
    %c0_18 = arith.constant 0 : index
    %c0_19 = arith.constant 0 : index
    %23 = vector.load %arg9[%c0_18, %c0_19] : memref<16x128xf32, #tpu.memory_space<vmem>>, vector<16x128xf32>
    %cst_20 = arith.constant dense<0.000000e+00> : vector<128x128xf32>
    %24 = tpu.matmul %22, %23, %cst_20 {dimension_numbers = #tpu.dot_dimension_numbers<[1], [0], [0], [1], [0, 0, 1, 1], [], []>} : vector<128x16xf32>, vector<16x128xf32>, vector<128x128xf32> -> vector<128x128xf32>
    %25 = arith.addf %24, %18 : vector<128x128xf32>
    %c0_21 = arith.constant 0 : index
    %c0_22 = arith.constant 0 : index
    %26 = vector.load %arg10[%c0_21, %c0_22] : memref<128x128xf32, #tpu.memory_space<vmem>>, vector<128x128xf32>
    tpu.vector_store %arg10[%c0_21, %c0_22], %25 {strides = array<i32>} : memref<128x128xf32, #tpu.memory_space<vmem>>, vector<128x128xf32>,
    return
  }
  func.func @transform_0(%arg0: i32) -> (i32, i32) {
    %c0_i32 = arith.constant 0 : i32
    %c0_i32_0 = arith.constant 0 : i32
    return %arg0, %c0_i32 : i32, i32
  }
  func.func @transform_1(%arg0: i32) -> (i32, i32) {
    %c0_i32 = arith.constant 0 : i32
    %c0_i32_0 = arith.constant 0 : i32
    return %arg0, %c0_i32 : i32, i32
  }
  func.func @transform_2(%arg0: i32) -> (i32, i32) {
    %c0_i32 = arith.constant 0 : i32
    %c0_i32_0 = arith.constant 0 : i32
    return %arg0, %c0_i32 : i32, i32
  }
  func.func @transform_3(%arg0: i32) -> (i32, i32) {
    %c0_i32 = arith.constant 0 : i32
    %c0_i32_0 = arith.constant 0 : i32
    %c0_i32_1 = arith.constant 0 : i32
    return %c0_i32, %c0_i32_0 : i32, i32
  }
  func.func @transform_4(%arg0: i32) -> (i32, i32) {
    %c0_i32 = arith.constant 0 : i32
    %c0_i32_0 = arith.constant 0 : i32
    %c0_i32_1 = arith.constant 0 : i32
    return %c0_i32, %c0_i32_0 : i32, i32
  }
  func.func @transform_5(%arg0: i32) -> (i32, i32) {
    %c0_i32 = arith.constant 0 : i32
    %c0_i32_0 = arith.constant 0 : i32
    %c0_i32_1 = arith.constant 0 : i32
    return %c0_i32, %c0_i32_0 : i32, i32
  }
  func.func @transform_6(%arg0: i32) -> (i32, i32) {
    %c0_i32 = arith.constant 0 : i32
    %c0_i32_0 = arith.constant 0 : i32
    %c0_i32_1 = arith.constant 0 : i32
    return %c0_i32, %c0_i32_0 : i32, i32
  }
  func.func @transform_7(%arg0: i32) -> (i32, i32) {
    %c0_i32 = arith.constant 0 : i32
    %c0_i32_0 = arith.constant 0 : i32
    %c0_i32_1 = arith.constant 0 : i32
    return %c0_i32, %c0_i32_0 : i32, i32
  }
  func.func @transform_8(%arg0: i32) -> (i32, i32) {
    %c0_i32 = arith.constant 0 : i32
    %c0_i32_0 = arith.constant 0 : i32
    %c0_i32_1 = arith.constant 0 : i32
    return %c0_i32, %c0_i32_0 : i32, i32
  }
  func.func @transform_9(%arg0: i32) -> (i32, i32) {
    %c0_i32 = arith.constant 0 : i32
    %c0_i32_0 = arith.constant 0 : i32
    return %arg0, %c0_i32 : i32, i32
  }
}

</mosaic_0001>

<bundles_post_ra>
// kernel: tpu_custom_call.1
= control target key start
LH: loop header
LB: loop body
LE: loop exit
PB: predicated region body
PF: predicated region fallthrough
CT: control target
= control target key end

     0   :  { %vm57_vm0 = vcmask 64512   ;;  %vm646_vm1 = vcmask 1043456   ;;  %v1411_v5 = vmov 0   ;;  %s1784_s0 = inlined_call_operand.vmem [shape: f32[128,8], index: 0, kind: input, shape index: {}]   ;;  %s1785_s1 = inlined_call_operand.vmem [shape: f32[128,4], index: 1, kind: input, shape index: {}]   ;;  %s1786_s2 = inlined_call_operand.vmem [shape: f32[128,1], index: 2, kind: input, shape index: {}]   ;;  %s1787_s3 = inlined_call_operand.vmem [shape: f32[8,16], index: 3, kind: input, shape index: {}]   ;;  %s1788_s4 = inlined_call_operand.vmem [shape: f32[1,16], index: 4, kind: input, shape index: {}]   ;;  %s1789_s5 = inlined_call_operand.vmem [shape: f32[8,128], index: 5, kind: input, shape index: {}]   ;;  %s1790_s6 = inlined_call_operand.vmem [shape: f32[1,128], index: 6, kind: input, shape index: {}]   ;;  %s1791_s7 = inlined_call_operand.vmem [shape: f32[4,16], index: 7, kind: input, shape index: {}]   ;;  %s1792_s8 = inlined_call_operand.vmem [shape: f32[16,128], index: 8, kind: input, shape index: {}]   ;;  %s1793_s9 = inlined_call_operand.hbm [shape: f32[128,128], index: 9, kind: output, shape index: {}]  }
   0x1   :  { %v49_v0 = vld [vmem:[%s1787_s3] sm:$0xff]  ;;  %v1474_v2 = vld [vmem:[%s1784_s0 + $0x8] sm:$0xff]  ;;  %v1483_v4 = vld [vmem:[%s1784_s0 + $0x10] sm:$0xff]  ;;  %1289 = vset.pattern.permute.xlu0 %v1411_v5  ;;  %1290 = vset.pattern.permute.xlu1 %v1411_v5 }
   0x2   :  { %v33_v1 = vld [vmem:[%s1784_s0] sm:$0xff]  ;;  %1175 = vmatprep.subr.mxu0 %v49_v0  ;;  %v1492_v6 = vld [vmem:[%s1784_s0 + $0x18] sm:$0xff]  ;;  %v1507_v8 = vld [vmem:[%s1784_s0 + $0x28] sm:$0xff] }
   0x3   :  { %1177 = vmatprep.mubr.msk.f32.mxu0 %vm57_vm0, %v33_v1  ;;  %v596_v3 = vld [vmem:[%s1791_s7] sm:$0xf]  ;;  %1176 = vmatpush3.msra.mxu0 %v49_v0  ;;  %v1512_v9 = vld [vmem:[%s1784_s0 + $0x30] sm:$0xff]  ;;  %v1527_v12 = vld [vmem:[%s1784_s0 + $0x38] sm:$0xff] }
   0x4   :  { %1178 = vmatmul.mubr.msk.f32.vlgmr.msra.gmra.mrb[0].mxu0 %vm57_vm0, %v1474_v2  ;;  %1227 = vmatprep.subr.msk.mxu0 %vm646_vm1, %v596_v3  ;;  %v1497_v7 = vld [vmem:[%s1784_s0 + $0x20] sm:$0xff]  ;;  %v269_v11 = vld [vmem:[%s1786_s2 + $0x10] sm:$0xff]  ;;  %v268_v13 = vld [vmem:[%s1786_s2 + $0x8] sm:$0xff] }
   0x5   :  { %1228 = vmatpush3.msk.msra.mxu0 %vm646_vm1, %v596_v3  ;;  %1180 = vmatprep.mubr.msk.f32.mxu0 %vm57_vm0, %v1483_v4  ;;  %v267_v10 = vld [vmem:[%s1786_s2] sm:$0xff]  ;;  %v270_v14 = vld [vmem:[%s1786_s2 + $0x18] sm:$0xff]  ;;  %v272_v17 = vld [vmem:[%s1786_s2 + $0x28] sm:$0xff] }
   0x6   :  { %1203 = vmatprep.mubr.msk.f32.mxu1 %vm57_vm0, %v33_v1  ;;  %1291 = vrcp.f32 %v267_v10  ;;  %v1538_v15 = vld [vmem:[%s1784_s0 + $0x40] sm:$0xff]  ;;  %v1553_v18 = vld [vmem:[%s1784_s0 + $0x48] sm:$0xff] }
   0x7   :  { %1293 = vrcp.f32 %v269_v11  ;;  %v271_v16 = vld [vmem:[%s1786_s2 + $0x20] sm:$0xff] }
   0x8   :  { %1181 = vmatmul.mubr.msk.f32.gmra.mrb[2].mxu0 %vm57_vm0, %v1492_v6  ;;  %1295 = vrcp.f32 %v268_v13 }
   0x9   :  { %1183 = vmatprep.mubr.msk.f32.mxu0 %vm57_vm0, %v1497_v7  ;;  %1297 = vrcp.f32 %v270_v14 }
   0xa   :  { %1299 = vrcp.f32 %v271_v16 }
   0xc   :  { %1184 = vmatmul.mubr.msk.f32.gmra.mrb[4].mxu0 %vm57_vm0, %v1507_v8 }
   0xd   :  { %1186 = vmatprep.mubr.msk.f32.mxu0 %vm57_vm0, %v1512_v9 }
  0x10   :  { %1187 = vmatmul.mubr.msk.f32.gmra.mrb[6].mxu0 %vm57_vm0, %v1527_v12 }
  0x11   :  { %1189 = vmatprep.mubr.msk.f32.mxu0 %vm57_vm0, %v1538_v15 }
  0x12   :  { %14 = vsyncpa [#allocation3], 0  ;;  %v1558_v19 = vld [vmem:[%s1784_s0 + $0x50] sm:$0xff]  ;;  %1301 = vrcp.f32 %v272_v17  ;;  %v274_v21 = vld [vmem:[%s1786_s2 + $0x38] sm:$0xff]  ;;  %v1292_v25 = vpop.eup %1291  ;;  %vm597_vm2 = vcmask 31744   ;;  %vm813_vm3 = vcmask 130048  }
  0x13   :  { %v273_v20 = vld [vmem:[%s1786_s2 + $0x30] sm:$0xff]  ;;  %v1573_v22 = vld [vmem:[%s1784_s0 + $0x58] sm:$0xff]  ;;  %v1578_v23 = vld [vmem:[%s1784_s0 + $0x60] sm:$0xff]  ;;  %v1294_v27 = vpop.eup %1293  ;;  %v299_v28 = vmul.f32 0.225, %v1292_v25 }
  0x14   :  { %1190 = vmatmul.mubr.msk.f32.gmra.mrb[8].mxu0 %vm57_vm0, %v1553_v18  ;;  %1303 = vrcp.f32 %v273_v20  ;;  %v275_v24 = vld [vmem:[%s1786_s2 + $0x40] sm:$0xff]  ;;  %v276_v26 = vld [vmem:[%s1786_s2 + $0x48] sm:$0xff]  ;;  %v1296_v29 = vpop.eup %1295  ;;  %v301_v31 = vmul.f32 0.225, %v1294_v27  ;;  %v1598_v33 = vld [vmem:[%s1784_s0 + $0x70] sm:$0xff] }
  0x15   :  { %1192 = vmatprep.mubr.msk.f32.mxu0 %vm57_vm0, %v1558_v19  ;;  %1305 = vrcp.f32 %v274_v21  ;;  %v1593_v30 = vld [vmem:[%s1784_s0 + $0x68] sm:$0xff]  ;;  %v1298_v32 = vpop.eup %1297  ;;  %317 = vperm.xlu0 %1289, %v299_v28   ;;  %v300_v34 = vmul.f32 0.225, %v1296_v29  ;;  %v277_v35 = vld [vmem:[%s1786_s2 + $0x50] sm:$0xff]  ;;  %v278_v38 = vld [vmem:[%s1786_s2 + $0x58] sm:$0xff] }
  0x16   :  { %1307 = vrcp.f32 %v275_v24  ;;  %v1300_v36 = vpop.eup %1299  ;;  %327 = vperm.xlu1 %1290, %v301_v31   ;;  %v302_v37 = vmul.f32 0.225, %v1298_v32  ;;  %v1613_v40 = vld [vmem:[%s1784_s0 + $0x78] sm:$0xff]  ;;  %v580_v41 = vld [vmem:[%s1785_s1] sm:$0xff]  ;;  %v280_v46 = vld [vmem:[%s1786_s2 + $0x68] sm:$0xff] }
  0x17   :  { %1309 = vrcp.f32 %v276_v26  ;;  %v303_v42 = vmul.f32 0.225, %v1300_v36  ;;  %v279_v43 = vld [vmem:[%s1786_s2 + $0x60] sm:$0xff]  ;;  %v581_v48 = vld [vmem:[%s1785_s1 + $0x8] sm:$0xff]  ;;  %v582_v49 = vld [vmem:[%s1785_s1 + $0x10] sm:$0xff] }
  0x18   :  { %1193 = vmatmul.mubr.msk.f32.gmra.mrb[10].mxu0 %vm57_vm0, %v1573_v22  ;;  %1311 = vrcp.f32 %v277_v35  ;;  %v281_v51 = vld [vmem:[%s1786_s2 + $0x70] sm:$0xff]  ;;  %v282_v54 = vld [vmem:[%s1786_s2 + $0x78] sm:$0xff]  ;;  %v584_v57 = vld [vmem:[%s1785_s1 + $0x20] sm:$0xff] }
  0x19   :  { %1195 = vmatprep.mubr.msk.f32.mxu0 %vm57_vm0, %v1578_v23  ;;  %322 = vperm.xlu0 %1289, %v300_v34   ;;  %1313 = vrcp.f32 %v278_v38  ;;  %v583_v56 = vld [vmem:[%s1785_s1 + $0x18] sm:$0xff]  ;;  %v585_v62 = vld [vmem:[%s1785_s1 + $0x28] sm:$0xff]  ;;  %v586_v63 = vld [vmem:[%s1785_s1 + $0x30] sm:$0xff] }
  0x1a   :  { %332 = vperm.xlu1 %1290, %v302_v37   ;;  %1315 = vrcp.f32 %v279_v43  ;;  %v587_v10 = vld [vmem:[%s1785_s1 + $0x38] sm:$0xff]  ;;  %v588_v11 = vld [vmem:[%s1785_s1 + $0x40] sm:$0xff]  ;;  %v589_v20 = vld [vmem:[%s1785_s1 + $0x48] sm:$0xff] }
  0x1b   :  { %1317 = vrcp.f32 %v280_v46  ;;  %v590_v21 = vld [vmem:[%s1785_s1 + $0x50] sm:$0xff]  ;;  %v591_v26 = vld [vmem:[%s1785_s1 + $0x58] sm:$0xff]  ;;  %v592_v27 = vld [vmem:[%s1785_s1 + $0x60] sm:$0xff] }
  0x1c   :  { %v1302_v39 = vpop.eup %1301  ;;  %1196 = vmatmul.mubr.msk.f32.gmra.mrb[12].mxu0 %vm57_vm0, %v1593_v30  ;;  %1319 = vrcp.f32 %v281_v51  ;;  %v593_v28 = vld [vmem:[%s1785_s1 + $0x68] sm:$0xff]  ;;  %v594_v29 = vld [vmem:[%s1785_s1 + $0x70] sm:$0xff]  ;;  %v595_v31 = vld [vmem:[%s1785_s1 + $0x78] sm:$0xff] }
  0x1d   :  { %1198 = vmatprep.mubr.msk.f32.mxu0 %vm57_vm0, %v1598_v33  ;;  %v304_v45 = vmul.f32 0.225, %v1302_v39  ;;  %337 = vperm.xlu0 %1289, %v303_v42   ;;  %1321 = vrcp.f32 %v282_v54  ;;  %v411_v32 = vld [vmem:[%s1789_s5] sm:$0xff]  ;;  %v812_v35 = vld [vmem:[%s1792_s8 + $0x8] sm:$0xff] }
  0x1e   :  { %v1304_v44 = vpop.eup %1303  ;;  %1201 = vmatprep.subr.mxu1 %v411_v32  ;;  %v811_v34 = vld [vmem:[%s1792_s8] sm:$0xff] }
  0x1f   :  { %v1306_v47 = vpop.eup %1305  ;;  %v305_v50 = vmul.f32 0.225, %v1304_v44  ;;  %342 = vperm.xlu1 %1290, %v304_v45   ;;  %1202 = vmatpush3.msra.mxu1 %v411_v32  ;;  %v1281_v36 = vpack.c.bf16 %v812_v35, %v811_v34 }
  0x20   :  { %1199 = vmatmul.mubr.msk.f32.gmra.mrb[14].mxu0 %vm57_vm0, %v1613_v40  ;;  %v1308_v52 = vpop.eup %1307  ;;  %v306_v53 = vmul.f32 0.225, %v1306_v47  ;;  %1204 = vmatmul.mubr.msk.f32.vlgmr.msra.gmra.mrb[0].mxu1 %vm57_vm0, %v1474_v2 }
  0x21   :  { %1229 = vmatprep.mubr.msk.f32.mxu0 %vm597_vm2, %v580_v41  ;;  %v1310_v55 = vpop.eup %1309  ;;  %347 = vperm.xlu0 %1289, %v305_v50   ;;  %v307_v58 = vmul.f32 0.225, %v1308_v52 }
  0x22   :  { %v1312_v59 = vpop.eup %1311  ;;  %v308_v60 = vmul.f32 0.225, %v1310_v55  ;;  %1206 = vmatprep.mubr.msk.f32.mxu1 %vm57_vm0, %v1483_v4  ;;  %1282 = vmatprep.subr.bf16.mxu1 %v1281_v36 }
  0x23   :  { %352 = vperm.xlu1 %1290, %v306_v53   ;;  %v1314_v61 = vpop.eup %1313  ;;  %v309_v0 = vmul.f32 0.225, %v1312_v59  ;;  %1284 = vmatpush3.bf16.msra.mxu1 %v1281_v36 }
  0x24   :  { %1230 = vmatmul.mubr.msk.f32.vlgmr.msra.gmra.mrb[16].mxu0 %vm597_vm2, %v581_v48  ;;  %v1316_v1 = vpop.eup %1315  ;;  %v310_v3 = vmul.f32 0.225, %v1314_v61  ;;  %1207 = vmatmul.mubr.msk.f32.gmra.mrb[2].mxu1 %vm57_vm0, %v1492_v6 }
  0x25   :  { %1232 = vmatprep.mubr.msk.f32.mxu0 %vm597_vm2, %v582_v49  ;;  %357 = vperm.xlu0 %1289, %v307_v58   ;;  %v1318_v5 = vpop.eup %1317  ;;  %v311_v13 = vmul.f32 0.225, %v1316_v1 }
  0x26   :  { %v1320_v14 = vpop.eup %1319  ;;  %v312_v16 = vmul.f32 0.225, %v1318_v5  ;;  %1209 = vmatprep.mubr.msk.f32.mxu1 %vm57_vm0, %v1497_v7 }
  0x27   :  { %362 = vperm.xlu1 %1290, %v308_v60   ;;  %v1322_v17 = vpop.eup %1321  ;;  %v313_v24 = vmul.f32 0.225, %v1320_v14 }
  0x28   :  { %1233 = vmatmul.mubr.msk.f32.gmra.mrb[18].mxu0 %vm597_vm2, %v583_v56  ;;  %v314_v25 = vmul.f32 0.225, %v1322_v17  ;;  %1210 = vmatmul.mubr.msk.f32.gmra.mrb[4].mxu1 %vm57_vm0, %v1507_v8 }
  0x29   :  { %1235 = vmatprep.mubr.msk.f32.mxu0 %vm597_vm2, %v584_v57  ;;  %367 = vperm.xlu0 %1289, %v309_v0  }
  0x2a   :  { %1212 = vmatprep.mubr.msk.f32.mxu1 %vm57_vm0, %v1512_v9 }
  0x2b   :  { %372 = vperm.xlu1 %1290, %v310_v3  }
  0x2c   :  { %1236 = vmatmul.mubr.msk.f32.gmra.mrb[20].mxu0 %vm597_vm2, %v585_v62  ;;  %1213 = vmatmul.mubr.msk.f32.gmra.mrb[6].mxu1 %vm57_vm0, %v1527_v12  ;;  %v1735_v12 = vld [vmem:[%s1788_s4] ss:$0 sm:$0xff] }
  0x2d   :  { %1238 = vmatprep.mubr.msk.f32.mxu0 %vm597_vm2, %v586_v63  ;;  %377 = vperm.xlu0 %1289, %v311_v13  }
  0x2e   :  { %1215 = vmatprep.mubr.msk.f32.mxu1 %vm57_vm0, %v1538_v15 }
  0x2f   :  { %382 = vperm.xlu1 %1290, %v312_v16  }
  0x30   :  { %1239 = vmatmul.mubr.msk.f32.gmra.mrb[22].mxu0 %vm597_vm2, %v587_v10  ;;  %1216 = vmatmul.mubr.msk.f32.gmra.mrb[8].mxu1 %vm57_vm0, %v1553_v18 }
  0x31   :  { %1241 = vmatprep.mubr.msk.f32.mxu0 %vm597_vm2, %v588_v11  ;;  %387 = vperm.xlu0 %1289, %v313_v24  }
  0x32   :  { %1218 = vmatprep.mubr.msk.f32.mxu1 %vm57_vm0, %v1558_v19 }
  0x33   :  { %392 = vperm.xlu1 %1290, %v314_v25  }
  0x34   :  { %1242 = vmatmul.mubr.msk.f32.gmra.mrb[24].mxu0 %vm597_vm2, %v589_v20  ;;  %1219 = vmatmul.mubr.msk.f32.gmra.mrb[10].mxu1 %vm57_vm0, %v1573_v22 }
  0x35   :  { %1244 = vmatprep.mubr.msk.f32.mxu0 %vm597_vm2, %v590_v21  ;;  %1221 = vmatprep.mubr.msk.f32.mxu1 %vm57_vm0, %v1578_v23 }
  0x38   :  { %1245 = vmatmul.mubr.msk.f32.gmra.mrb[26].mxu0 %vm597_vm2, %v591_v26  ;;  %1222 = vmatmul.mubr.msk.f32.gmra.mrb[12].mxu1 %vm57_vm0, %v1593_v30 }
  0x39   :  { %1247 = vmatprep.mubr.msk.f32.mxu0 %vm597_vm2, %v592_v27  ;;  %1224 = vmatprep.mubr.msk.f32.mxu1 %vm57_vm0, %v1598_v33 }
  0x3c   :  { %1248 = vmatmul.mubr.msk.f32.gmra.mrb[28].mxu0 %vm597_vm2, %v593_v28  ;;  %1225 = vmatmul.mubr.msk.f32.gmra.mrb[14].mxu1 %vm57_vm0, %v1613_v40 }
  0x3d   :  { %1250 = vmatprep.mubr.msk.f32.mxu0 %vm597_vm2, %v594_v29 }
  0x40   :  { %1251 = vmatmul.mubr.msk.f32.gmra.mrb[30].mxu0 %vm597_vm2, %v595_v31 }
  0x94   :  { %v318_v33 = vpop.permute.xlu0 %317 }
  0x95   :  { %v328_v23 = vpop.permute.xlu1 %327 }
  0x98   :  { %v323_v44 = vpop.permute.xlu0 %322 }
  0x99   :  { %v333_v43 = vpop.permute.xlu1 %332 }
  0x9c   :  { %v338_v54 = vpop.permute.xlu0 %337 }
  0x9e   :  { %v343_v51 = vpop.permute.xlu1 %342 }
  0xa0   :  { %v348_v11 = vpop.permute.xlu0 %347 }
  0xa2   :  { %v353_v1 = vpop.permute.xlu1 %352 }
  0xa4   :  { %v358_v36 = vpop.permute.xlu0 %357 }
  0xa6   :  { %v363_v31 = vpop.permute.xlu1 %362 }
  0xd7   :  { %v1179_v2 = vpop.f32.mrb[0].mxu0 }
  0xd8   :  { %v172_v4 = vpop.f32.mrb[1].mxu0  ;;  %v178_v19 = vadd.f32 %v1179_v2, %v1735_v12 }
  0xd9   :  { %v173_v22 = vadd.f32 %v1735_v12, %v172_v4 }
  0xda   :  { %1323 = vtanh.f32 %v178_v19 }
  0xdb   :  { %v1182_v6 = vpop.f32.mrb[2].mxu0  ;;  %1325 = vtanh.f32 %v173_v22 }
  0xdc   :  { %v182_v7 = vpop.f32.mrb[3].mxu0  ;;  %v188_v38 = vadd.f32 %v1182_v6, %v1735_v12 }
  0xdd   :  { %v183_v39 = vadd.f32 %v1735_v12, %v182_v7 }
  0xde   :  { %1327 = vtanh.f32 %v188_v38 }
  0xdf   :  { %v1185_v8 = vpop.f32.mrb[4].mxu0  ;;  %1329 = vtanh.f32 %v183_v39  ;;  %v368_v39 = vpop.permute.xlu0 %367 }
  0xe0   :  { %v192_v9 = vpop.f32.mrb[5].mxu0  ;;  %v198_v42 = vadd.f32 %v1185_v8, %v1735_v12 }
  0xe1   :  { %v193_v45 = vadd.f32 %v1735_v12, %v192_v9 }
  0xe2   :  { %1331 = vtanh.f32 %v198_v42 }
  0xe3   :  { %v1188_v15 = vpop.f32.mrb[6].mxu0  ;;  %1333 = vtanh.f32 %v193_v45 }
  0xe4   :  { %v202_v18 = vpop.f32.mrb[7].mxu0  ;;  %v208_v48 = vadd.f32 %v1188_v15, %v1735_v12  ;;  %v1324_v50 = vpop.eup %1323 }
  0xe5   :  { %v203_v49 = vadd.f32 %v1735_v12, %v202_v18  ;;  %v1326_v53 = vpop.eup %1325  ;;  %v396_v57 = vmul.f32 %v1324_v50, %v323_v44 }
  0xe6   :  { %1335 = vtanh.f32 %v208_v48  ;;  %v395_v61 = vmul.f32 %v1326_v53, %v318_v33  ;;  %v373_v33 = vpop.permute.xlu1 %372 }
  0xe7   :  { %v1191_v30 = vpop.f32.mrb[8].mxu0  ;;  %1337 = vtanh.f32 %v203_v49 }
  0xe8   :  { %v212_v37 = vpop.f32.mrb[9].mxu0  ;;  %v218_v56 = vadd.f32 %v1191_v30, %v1735_v12  ;;  %v1328_v59 = vpop.eup %1327 }
  0xe9   :  { %v213_v58 = vadd.f32 %v1735_v12, %v212_v37  ;;  %v1330_v62 = vpop.eup %1329  ;;  %v398_v10 = vmul.f32 %v1328_v59, %v333_v43 }
  0xea   :  { %1339 = vtanh.f32 %v218_v56  ;;  %v397_v17 = vmul.f32 %v1330_v62, %v328_v23  ;;  %v383_v48 = vpop.permute.xlu1 %382 }
  0xeb   :  { %v1194_v40 = vpop.f32.mrb[10].mxu0  ;;  %1341 = vtanh.f32 %v213_v58 }
  0xec   :  { %v222_v41 = vpop.f32.mrb[11].mxu0  ;;  %v228_v3 = vadd.f32 %v1194_v40, %v1735_v12  ;;  %v1332_v14 = vpop.eup %1331 }
  0xed   :  { %v223_v13 = vadd.f32 %v1735_v12, %v222_v41  ;;  %v1334_v20 = vpop.eup %1333  ;;  %v400_v27 = vmul.f32 %v1332_v14, %v343_v51 }
  0xee   :  { %1343 = vtanh.f32 %v228_v3  ;;  %v399_v34 = vmul.f32 %v1334_v20, %v338_v54 }
  0xef   :  { %v1197_v46 = vpop.f32.mrb[12].mxu0  ;;  %1345 = vtanh.f32 %v223_v13 }
  0xf0   :  { %v232_v47 = vpop.f32.mrb[13].mxu0  ;;  %v238_v25 = vadd.f32 %v1197_v46, %v1735_v12  ;;  %v1336_v29 = vpop.eup %1335 }
  0xf1   :  { %v233_v28 = vadd.f32 %v1735_v12, %v232_v47  ;;  %v1338_v35 = vpop.eup %1337  ;;  %v402_v8 = vmul.f32 %v1336_v29, %v353_v1 }
  0xf2   :  { %1347 = vtanh.f32 %v238_v25  ;;  %v401_v19 = vmul.f32 %v1338_v35, %v348_v11 }
  0xf3   :  { %v1200_v52 = vpop.f32.mrb[14].mxu0  ;;  %1349 = vtanh.f32 %v233_v28 }
  0xf4   :  { %v242_v55 = vpop.f32.mrb[15].mxu0  ;;  %v248_v6 = vadd.f32 %v1200_v52, %v1735_v12  ;;  %v1340_v15 = vpop.eup %1339 }
  0xf5   :  { %v243_v9 = vadd.f32 %v1735_v12, %v242_v55  ;;  %v1342_v22 = vpop.eup %1341  ;;  %v404_v38 = vmul.f32 %v1340_v15, %v363_v31  ;;  %v378_v52 = vpop.permute.xlu0 %377 }
  0xf6   :  { %1351 = vtanh.f32 %v248_v6  ;;  %v403_v12 = vmul.f32 %v1342_v22, %v358_v36 }
  0xf7   :  { %v1231_v60 = vpop.f32.mrb[16].mxu0  ;;  %1353 = vtanh.f32 %v243_v9 }
  0xf8   :  { %v796_v63 = vmul.f32 %v1231_v60, %v396_v57  ;;  %v716_v0 = vpop.f32.mrb[17].mxu0  ;;  %v1344_v40 = vpop.eup %1343 }
  0xf9   :  { %v795_v5 = vmul.f32 %v716_v0, %v395_v61  ;;  %v1346_v42 = vpop.eup %1345  ;;  %v406_v46 = vmul.f32 %v1344_v40, %v373_v33  ;;  %v388_v1 = vpop.permute.xlu0 %387 }
  0xfa   :  { %v405_v50 = vmul.f32 %v1346_v42, %v368_v39 }
  0xfb   :  { %v1234_v16 = vpop.f32.mrb[18].mxu0  ;;  %1257 = vmatprep.mubr.msk.f32.mxu1 %vm813_vm3, %v795_v5 }
  0xfc   :  { %v798_v21 = vmul.f32 %v1234_v16, %v398_v10  ;;  %v726_v24 = vpop.f32.mrb[19].mxu0  ;;  %1258 = vmatmul.mubr.msk.f32.vlgmr.msra.gmra.mrb[16].mxu1 %vm813_vm3, %v796_v63  ;;  %v1348_v47 = vpop.eup %1347 }
  0xfd   :  { %v797_v26 = vmul.f32 %v726_v24, %v397_v17  ;;  %v1350_v51 = vpop.eup %1349  ;;  %v408_v56 = vmul.f32 %v1348_v47, %v383_v48  ;;  %v393_v63 = vpop.permute.xlu1 %392 }
  0xfe   :  { %v407_v59 = vmul.f32 %v1350_v51, %v378_v52  ;;  %v1205_v16 = vpop.f32.mrb[0].mxu1 }
  0xff   :  { %v1237_v32 = vpop.f32.mrb[20].mxu0  ;;  %1260 = vmatprep.mubr.msk.f32.mxu1 %vm813_vm3, %v797_v26  ;;  %v485_v17 = vpop.f32.mrb[1].mxu1 }
 0x100   :  { %v800_v2 = vmul.f32 %v1237_v32, %v400_v27  ;;  %v736_v4 = vpop.f32.mrb[21].mxu0  ;;  %1261 = vmatmul.mubr.msk.f32.gmra.mrb[18].mxu1 %vm813_vm3, %v798_v21  ;;  %v1352_v57 = vpop.eup %1351 }
 0x101   :  { %v799_v7 = vmul.f32 %v736_v4, %v399_v34  ;;  %v1354_v60 = vpop.eup %1353  ;;  %v410_v3 = vmul.f32 %v1352_v57, %v393_v63  ;;  %v1208_v20 = vpop.f32.mrb[2].mxu1  ;;  %v1056_v4 = vld [vmem:[%s1790_s6] ss:$0 sm:$0xff]  ;;  %s1412_s6 = smov [#allocation2]  }
 0x102   :  { %v409_v10 = vmul.f32 %v1354_v60, %v388_v1  ;;  %v495_v21 = vpop.f32.mrb[3].mxu1  ;;  %v491_v6 = vadd.f32 %v1205_v16, %v1056_v4  ;;  %s1028_s18 = sshll.u32 %s1412_s6, 4  ;;  %s1029_s18 = int_to_ptr.vmem [resolvable:$true] %s1028_s18 }
 0x103   :  { %v1240_v18 = vpop.f32.mrb[22].mxu0  ;;  %1263 = vmatprep.mubr.msk.f32.mxu1 %vm813_vm3, %v799_v7  ;;  %v1211_v24 = vpop.f32.mrb[4].mxu1  ;;  %v486_v7 = vadd.f32 %v1056_v4, %v485_v17  ;;  %v496_v9 = vadd.f32 %v1056_v4, %v495_v21  ;;  %s1387_s19 = scalar_lea.vmem %s1029_s18, 2048  ;;  %p1392_p1 = scmp.lt.s32.totalorder %s1029_s18, %s1029_s18 }
 0x104   :  { %v802_v23 = vmul.f32 %v1240_v18, %v402_v8  ;;  %v746_v30 = vpop.f32.mrb[23].mxu0  ;;  %1264 = vmatmul.mubr.msk.f32.gmra.mrb[20].mxu1 %vm813_vm3, %v800_v2  ;;  %v505_v25 = vpop.f32.mrb[5].mxu1  ;;  %1355 = vtanh.f32 %v491_v6  ;;  %v501_v8 = vadd.f32 %v1208_v20, %v1056_v4  ;;  %v511_v15 = vadd.f32 %v1211_v24, %v1056_v4  ;;  %p1388_p0 = scmp.ne.s32.totalorder %s1029_s18, %s1387_s19  ;;  %p1393_p2 = scmp.lt.s32.totalorder %s1387_s19, %s1387_s19 }
 0x105   :  { %v801_v37 = vmul.f32 %v746_v30, %v401_v19  ;;  %v1214_v26 = vpop.f32.mrb[6].mxu1  ;;  %1357 = vtanh.f32 %v486_v7  ;;  %v506_v18 = vadd.f32 %v1056_v4, %v505_v25 }
 0x106   :  { %v515_v27 = vpop.f32.mrb[7].mxu1  ;;  %1359 = vtanh.f32 %v501_v8  ;;  %v521_v19 = vadd.f32 %v1214_v26, %v1056_v4  ;;  %p1394_p3 = por %p1393_p2, %p1392_p1 }
 0x107   :  { %v1243_v41 = vpop.f32.mrb[24].mxu0  ;;  %1266 = vmatprep.mubr.msk.f32.mxu1 %vm813_vm3, %v801_v37  ;;  %v1217_v28 = vpop.f32.mrb[8].mxu1  ;;  %1361 = vtanh.f32 %v496_v9  ;;  %v516_v22 = vadd.f32 %v1056_v4, %v515_v27 }
 0x108   :  { %v804_v43 = vmul.f32 %v1243_v41, %v404_v38  ;;  %v756_v44 = vpop.f32.mrb[25].mxu0  ;;  %1267 = vmatmul.mubr.msk.f32.gmra.mrb[22].mxu1 %vm813_vm3, %v802_v23  ;;  %v525_v29 = vpop.f32.mrb[9].mxu1  ;;  %1363 = vtanh.f32 %v511_v15  ;;  %v531_v39 = vadd.f32 %v1217_v28, %v1056_v4  ;;  %p1395_p4 = pnand %p1394_p3, %p1388_p0 }
 0x109   :  { %v803_v45 = vmul.f32 %v756_v44, %v403_v12  ;;  %v1220_v31 = vpop.f32.mrb[10].mxu1  ;;  %1365 = vtanh.f32 %v506_v18  ;;  %v526_v41 = vadd.f32 %v1056_v4, %v525_v29 }
 0x10a   :  { %v535_v32 = vpop.f32.mrb[11].mxu1  ;;  %1367 = vtanh.f32 %v521_v19 }
 0x10b   :  { %v1246_v49 = vpop.f32.mrb[26].mxu0  ;;  %1269 = vmatprep.mubr.msk.f32.mxu1 %vm813_vm3, %v803_v45  ;;  %v1223_v34 = vpop.f32.mrb[12].mxu1  ;;  %1369 = vtanh.f32 %v516_v22  ;;  %v536_v48 = vadd.f32 %v1056_v4, %v535_v32 }
 0x10c   :  { %v806_v53 = vmul.f32 %v1246_v49, %v406_v46  ;;  %v766_v54 = vpop.f32.mrb[27].mxu0  ;;  %1270 = vmatmul.mubr.msk.f32.gmra.mrb[24].mxu1 %vm813_vm3, %v804_v43  ;;  %v545_v35 = vpop.f32.mrb[13].mxu1  ;;  %1371 = vtanh.f32 %v531_v39  ;;  %v541_v46 = vadd.f32 %v1220_v31, %v1056_v4 }
 0x10d   :  { %v805_v55 = vmul.f32 %v766_v54, %v405_v50  ;;  %1373 = vtanh.f32 %v526_v41  ;;  %v551_v54 = vadd.f32 %v1223_v34, %v1056_v4 }
 0x10e   :  { %v1356_v23 = vpop.eup %1355  ;;  %1375 = vtanh.f32 %v541_v46 }
 0x10f   :  { %v1249_v58 = vpop.f32.mrb[28].mxu0  ;;  %1272 = vmatprep.mubr.msk.f32.mxu1 %vm813_vm3, %v805_v55  ;;  %v1226_v36 = vpop.f32.mrb[14].mxu1  ;;  %1377 = vtanh.f32 %v536_v48 }
 0x110   :  { %v808_v61 = vmul.f32 %v1249_v58, %v408_v56  ;;  %v776_v62 = vpop.f32.mrb[29].mxu0  ;;  %1273 = vmatmul.mubr.msk.f32.gmra.mrb[26].mxu1 %vm813_vm3, %v806_v53  ;;  %v555_v2 = vpop.f32.mrb[15].mxu1  ;;  %v546_v56 = vadd.f32 %v1056_v4, %v545_v35  ;;  %1379 = vtanh.f32 %v551_v54 }
 0x111   :  { %v807_v0 = vmul.f32 %v776_v62, %v407_v59  ;;  %v1358_v33 = vpop.eup %1357  ;;  %v561_v62 = vadd.f32 %v1226_v36, %v1056_v4 }
 0x112   :  { %v1360_v12 = vpop.eup %1359  ;;  %1381 = vtanh.f32 %v546_v56 }
 0x113   :  { %v1252_v5 = vpop.f32.mrb[30].mxu0  ;;  %1275 = vmatprep.mubr.msk.f32.mxu1 %vm813_vm3, %v807_v0  ;;  %v1362_v43 = vpop.eup %1361  ;;  %v556_v0 = vadd.f32 %v1056_v4, %v555_v2  ;;  %1383 = vtanh.f32 %v561_v62 }
 0x114   :  { %v810_v11 = vmul.f32 %v1252_v5, %v410_v3  ;;  %v786_v13 = vpop.f32.mrb[31].mxu0  ;;  %1276 = vmatmul.mubr.msk.f32.gmra.mrb[28].mxu1 %vm813_vm3, %v808_v61  ;;  %v1364_v49 = vpop.eup %1363 }
 0x115   :  { %v809_v14 = vmul.f32 %v786_v13, %v409_v10  ;;  %v1366_v51 = vpop.eup %1365  ;;  %1385 = vtanh.f32 %v556_v0 }
 0x116   :  { %v1368_v57 = vpop.eup %1367 }
 0x117   :  { %1278 = vmatprep.mubr.msk.f32.mxu1 %vm813_vm3, %v809_v14  ;;  %v1370_v59 = vpop.eup %1369 }
 0x118   :  { %1279 = vmatmul.mubr.msk.f32.gmra.mrb[30].mxu1 %vm813_vm3, %v810_v11  ;;  %v1372_v1 = vpop.eup %1371 }
 0x119   :  { %v1374_v5 = vpop.eup %1373 }
 0x11a   :  { %v1376_v14 = vpop.eup %1375 }
 0x11b   :  { %v1378_v17 = vpop.eup %1377 }
 0x11c   :  { %v1380_v25 = vpop.eup %1379 }
 0x11d   :  { %v1382_v27 = vpop.eup %1381 }
 0x11e   :  { %v1384_v32 = vpop.eup %1383 }
 0x11f   :  { %v1386_v35 = vpop.eup %1385 }
 0x1cf   :  { %v1259_v30 = vpop.f32.mrb[16].mxu1 }
 0x1d0   :  { %v934_v37 = vadd.f32 %v1356_v23, %v1259_v30  ;;  %v928_v38 = vpop.f32.mrb[17].mxu1 }
 0x1d1   :  { %v929_v40 = vadd.f32 %v1358_v33, %v928_v38 }
 0x1d2   :  { %1008 = vst [vmem:[#allocation2 + $0x8] sm:$0xff] %v934_v37 }
 0x1d3   :  { %1007 = vst [vmem:[#allocation2] sm:$0xff] %v929_v40  ;;  %v1262_v42 = vpop.f32.mrb[18].mxu1 }
 0x1d4   :  { %v944_v44 = vadd.f32 %v1360_v12, %v1262_v42  ;;  %v938_v45 = vpop.f32.mrb[19].mxu1 }
 0x1d5   :  { %v939_v47 = vadd.f32 %v1362_v43, %v938_v45 }
 0x1d6   :  { %1010 = vst [vmem:[#allocation2 + $0x18] sm:$0xff] %v944_v44 }
 0x1d7   :  { %1009 = vst [vmem:[#allocation2 + $0x10] sm:$0xff] %v939_v47  ;;  %v1265_v50 = vpop.f32.mrb[20].mxu1 }
 0x1d8   :  { %v954_v52 = vadd.f32 %v1364_v49, %v1265_v50  ;;  %v948_v53 = vpop.f32.mrb[21].mxu1 }
 0x1d9   :  { %v949_v55 = vadd.f32 %v1366_v51, %v948_v53 }
 0x1da   :  { %1012 = vst [vmem:[#allocation2 + $0x28] sm:$0xff] %v954_v52 }
 0x1db   :  { %1011 = vst [vmem:[#allocation2 + $0x20] sm:$0xff] %v949_v55  ;;  %v1268_v58 = vpop.f32.mrb[22].mxu1 }
 0x1dc   :  { %v964_v60 = vadd.f32 %v1368_v57, %v1268_v58  ;;  %v958_v61 = vpop.f32.mrb[23].mxu1 }
 0x1dd   :  { %v959_v63 = vadd.f32 %v1370_v59, %v958_v61 }
 0x1de   :  { %1014 = vst [vmem:[#allocation2 + $0x38] sm:$0xff] %v964_v60 }
 0x1df   :  { %1013 = vst [vmem:[#allocation2 + $0x30] sm:$0xff] %v959_v63  ;;  %v1271_v3 = vpop.f32.mrb[24].mxu1 }
 0x1e0   :  { %v974_v10 = vadd.f32 %v1372_v1, %v1271_v3  ;;  %v968_v11 = vpop.f32.mrb[25].mxu1 }
 0x1e1   :  { %v969_v13 = vadd.f32 %v1374_v5, %v968_v11 }
 0x1e2   :  { %1016 = vst [vmem:[#allocation2 + $0x48] sm:$0xff] %v974_v10 }
 0x1e3   :  { %1015 = vst [vmem:[#allocation2 + $0x40] sm:$0xff] %v969_v13  ;;  %v1274_v16 = vpop.f32.mrb[26].mxu1 }
 0x1e4   :  { %v984_v20 = vadd.f32 %v1376_v14, %v1274_v16  ;;  %v978_v21 = vpop.f32.mrb[27].mxu1 }
 0x1e5   :  { %v979_v24 = vadd.f32 %v1378_v17, %v978_v21 }
 0x1e6   :  { %1018 = vst [vmem:[#allocation2 + $0x58] sm:$0xff] %v984_v20 }
 0x1e7   :  { %1017 = vst [vmem:[#allocation2 + $0x50] sm:$0xff] %v979_v24  ;;  %v1277_v26 = vpop.f32.mrb[28].mxu1 }
 0x1e8   :  { %v994_v28 = vadd.f32 %v1380_v25, %v1277_v26  ;;  %v988_v29 = vpop.f32.mrb[29].mxu1 }
 0x1e9   :  { %v989_v31 = vadd.f32 %v1382_v27, %v988_v29 }
 0x1ea   :  { %1020 = vst [vmem:[#allocation2 + $0x68] sm:$0xff] %v994_v28 }
 0x1eb   :  { %1019 = vst [vmem:[#allocation2 + $0x60] sm:$0xff] %v989_v31  ;;  %v1280_v34 = vpop.f32.mrb[30].mxu1 }
 0x1ec   :  { %v1004_v36 = vadd.f32 %v1384_v32, %v1280_v34  ;;  %v998_v2 = vpop.f32.mrb[31].mxu1 }
 0x1ed   :  { %v999_v4 = vadd.f32 %v1386_v35, %v998_v2 }
 0x1ee   :  { %1022 = vst [vmem:[#allocation2 + $0x78] sm:$0xff] %v1004_v36 }
 0x1ef   :  { %1021 = vst [vmem:[#allocation2 + $0x70] sm:$0xff] %v999_v4 }
 0x1f0   :  { %1398 = shalt.err (!%p1395_p4)
}
 0x1f1   :  { %s1399_s21 = scalar_lea.hbm %s1793_s9, 2048 }
 0x1f2   :  { %p1400_p5 = scmp.ne.s32.totalorder %s1793_s9, %s1399_s21  ;;  %p1403_p6 = scmp.lt.u32.totalorder %s1399_s21, %s1793_s9 }
 0x1f4   :  { %p1405_p7 = pnand %p1403_p6, %p1400_p5 }
 0x1f6   :  { %1408 = shalt.err (!%p1405_p7)
}
 0x1f7   :  { %s1413_s26 = smov 128   ;;  %s1414_s0 = smov 8  }
 0x1f8   :  { %1034 = dma.vmem_to_hbm [thread:$0]  %s1029_s18, 2048, %s1793_s9, [#allocation3], %s1413_s26, %s1413_s26, %s1414_s0  }
 0x1f9   :  { %1409 = dma.done.wait [#allocation3], 2048  }
 0x1fa   :  { %1410 = vsyncadd [#allocation3], 4294965248 }
 0x1fb   :  { %1038 = vsyncpa [#allocation3], 1 }

</bundles_post_ra>
